<compile_context>
chip_gen: v7x
topology: tpu7x:2x2x1
jax: 0.10.0
libtpu: 0.0.40
codegen_flags: <defaults>
</compile_context>

<pallas_src>
import jax
import jax.numpy as jnp
from jax.experimental import pallas as pl
from jax.experimental.pallas import tpu as pltpu


def _round_up(x: int, m: int) -> int:
    return (x + m - 1) // m * m


def _linear_probe_kernel(z_ref, wt_ref, b_ref, c_ref, p_ref):
    # z_ref:  [tile_b, D_in]    (VMEM)
    # wt_ref: [D_in,  tile_n]   (VMEM, already transposed to [K, N])
    # b_ref:  [1,     tile_n]   (VMEM)
    # c_ref:  [tile_b, tile_n]  pre-activation output
    # p_ref:  [tile_b, tile_n]  sigmoid(c)
    c = jnp.dot(z_ref[...], wt_ref[...], preferred_element_type=jnp.float32)
    c = c + b_ref[...].astype(jnp.float32)        # broadcast bias over rows
    c_ref[...] = c.astype(c_ref.dtype)
    # Sigmoid in f32 (exp goes to the EUP slot); downcast only at the store.
    p_ref[...] = jax.nn.sigmoid(c).astype(p_ref.dtype)


def _choose_tiles(B, D_in, D_out, in_bytes, out_bytes):
    """Pick (tile_b, tile_n) so the double-buffered working set fits a
    conservative scoped-VMEM budget on v5e/v6e/v7x."""
    # N tile: full extent when small (no padded writeback for tiny probes),
    # otherwise a lane-dense multiple of 128.
    tile_n = D_out if D_out <= 256 else 256
    tile_b = min(512, _round_up(max(B, 1), 8))

    def footprint(tb, tn):
        z = 2 * tb * D_in * in_bytes          # z tile, double-buffered
        w = 2 * D_in * tn * in_bytes          # W^T tile, double-buffered
        b = 2 * tn * in_bytes                 # bias tile
        o = 2 * 2 * tb * tn * out_bytes       # c and p tiles, double-buffered
        return z + w + b + o

    budget = 24 * 1024 * 1024
    while tile_b > 8 and footprint(tile_b, tile_n) > budget:
        tile_b = max(8, _round_up(tile_b // 2, 8))
    while tile_n > 128 and tile_n % 128 == 0 and footprint(tile_b, tile_n) > budget:
        tile_n = max(128, tile_n // 2)
    return tile_b, tile_n, footprint(tile_b, tile_n)


@jax.jit
def linear_probe_forward(z, weight, bias):
    """z: [B, D_in]; weight: [D_out, D_in] (PyTorch layout); bias: [D_out].

    Returns (c, sigmoid(c)), each [B, D_out] in z.dtype.
    """
    B, D_in = z.shape
    D_out = weight.shape[0]
    out_dtype = z.dtype

    # One-time XLA transpose to MXU-natural [K, N]; W is tiny vs. z so this is
    # essentially free and guarantees no in-kernel transpose per grid step.
    w_t = weight.T                      # [D_in, D_out]
    b2d = bias.reshape(1, D_out)

    in_bytes = jnp.dtype(z.dtype).itemsize
    out_bytes = jnp.dtype(out_dtype).itemsize
    tile_b, tile_n, fp = _choose_tiles(B, D_in, D_out, in_bytes, out_bytes)

    grid = (pl.cdiv(B, tile_b), pl.cdiv(D_out, tile_n))
    vmem_limit = int(min(64 * 2**20, max(2 * fp + (1 << 20), 16 * 2**20)))

    out_shapes = (
        jax.ShapeDtypeStruct((B, D_out), out_dtype),
        jax.ShapeDtypeStruct((B, D_out), out_dtype),
    )

    c, p = pl.pallas_call(
        _linear_probe_kernel,
        out_shape=out_shapes,
        grid_spec=pltpu.PrefetchScalarGridSpec(
            num_scalar_prefetch=0,
            grid=grid,
            in_specs=[
                # z: batch-tiled, full contraction extent (no undefined K vals).
                pl.BlockSpec((tile_b, D_in), lambda i, j: (i, 0)),
                # W^T: N-tiled (resident when grid_j == 1), full K extent.
                pl.BlockSpec((D_in, tile_n), lambda i, j: (0, j)),
                # bias: N-tiled.
                pl.BlockSpec((1, tile_n), lambda i, j: (0, j)),
            ],
            out_specs=[
                pl.BlockSpec((tile_b, tile_n), lambda i, j: (i, j)),
                pl.BlockSpec((tile_b, tile_n), lambda i, j: (i, j)),
            ],
        ),
        compiler_params=pltpu.CompilerParams(
            # Batch tiles and D_out tiles are independent -> both parallel
            # (lets Mosaic shard across both TensorCores on v7x).
            dimension_semantics=("parallel", "parallel"),
            vmem_limit_bytes=vmem_limit,
        ),
    )(z, w_t, b2d)

    return c, p


def _check(key, B, D_in, D_out):
    k_z, k_w, k_b = jax.random.split(key, 3)
    z = jax.random.normal(k_z, (B, D_in), dtype=jnp.float32)
    # Mimic nn.Linear init: uniform(-1/sqrt(fan_in), 1/sqrt(fan_in)).
    bound = 1.0 / jnp.sqrt(jnp.float32(D_in))
    weight = jax.random.uniform(k_w, (D_out, D_in), minval=-bound, maxval=bound,
                                dtype=jnp.float32)
    bias = jax.random.uniform(k_b, (D_out,), minval=-bound, maxval=bound,
                              dtype=jnp.float32)

    c, p = linear_probe_forward(z, weight, bias)
    jax.block_until_ready((c, p))

    c_ref = z @ weight.T + bias
    p_ref = jax.nn.sigmoid(c_ref)
    assert c.shape == (B, D_out) and p.shape == (B, D_out)
    assert jnp.allclose(c, c_ref, atol=1e-5), "pre-activation mismatch"
    assert jnp.allclose(p, p_ref, atol=1e-5), "sigmoid output mismatch"


if __name__ == "__main__":
    key = jax.random.PRNGKey(0)
    k0, k1 = jax.random.split(key)

    # Small shapes consistent with the module: batch=8, num_inputs=32, num_outputs=16.
    _check(k0, B=8, D_in=32, D_out=16)
    # Ragged / non-aligned shapes to exercise masked (full-extent) tiles.
    _check(k1, B=10, D_in=40, D_out=17)

    print("KERNEL_OK")
</pallas_src>

<mosaic_0001>
module attributes {stable_mosaic.version = 11 : i64} {
  func.func @_linear_probe_kernel(%arg0: i32, %arg1: i32, %arg2: memref<8x32xf32, #tpu.memory_space<vmem>>, %arg3: memref<32x16xf32, #tpu.memory_space<vmem>>, %arg4: memref<1x16xf32, #tpu.memory_space<vmem>>, %arg5: memref<8x16xf32, #tpu.memory_space<vmem>>, %arg6: memref<8x16xf32, #tpu.memory_space<vmem>>) attributes {dimension_semantics = [#tpu.dimension_semantics<parallel>, #tpu.dimension_semantics<parallel>], iteration_bounds = array<i64: 1, 1>, scalar_prefetch = 0 : i64, scratch_operands = 0 : i64, tpu.core_type = #tpu.core_type<tc>, window_params = [{transform_indices = @transform_0, window_bounds = array<i64: 8, 32>}, {transform_indices = @transform_1, window_bounds = array<i64: 32, 16>}, {transform_indices = @transform_2, window_bounds = array<i64: 1, 16>}, {transform_indices = @transform_3, window_bounds = array<i64: 8, 16>}, {transform_indices = @transform_4, window_bounds = array<i64: 8, 16>}]} {
    %c0 = arith.constant 0 : index
    %c0_0 = arith.constant 0 : index
    %0 = vector.load %arg2[%c0, %c0_0] : memref<8x32xf32, #tpu.memory_space<vmem>>, vector<8x32xf32>
    %c0_1 = arith.constant 0 : index
    %c0_2 = arith.constant 0 : index
    %1 = vector.load %arg3[%c0_1, %c0_2] : memref<32x16xf32, #tpu.memory_space<vmem>>, vector<32x16xf32>
    %cst = arith.constant dense<0.000000e+00> : vector<8x16xf32>
    %2 = tpu.matmul %0, %1, %cst {dimension_numbers = #tpu.dot_dimension_numbers<[1], [0], [0], [1], [0, 0, 1, 1], [], []>} : vector<8x32xf32>, vector<32x16xf32>, vector<8x16xf32> -> vector<8x16xf32>
    %c0_3 = arith.constant 0 : index
    %c0_4 = arith.constant 0 : index
    %3 = vector.load %arg4[%c0_3, %c0_4] : memref<1x16xf32, #tpu.memory_space<vmem>>, vector<1x16xf32>
    %4 = vector.broadcast %3 : vector<1x16xf32> to vector<8x16xf32>
    %5 = arith.addf %2, %4 : vector<8x16xf32>
    %c0_5 = arith.constant 0 : index
    %c0_6 = arith.constant 0 : index
    %6 = vector.load %arg5[%c0_5, %c0_6] : memref<8x16xf32, #tpu.memory_space<vmem>>, vector<8x16xf32>
    tpu.vector_store %arg5[%c0_5, %c0_6], %5 {strides = array<i32>} : memref<8x16xf32, #tpu.memory_space<vmem>>, vector<8x16xf32>,
    %7 = arith.negf %5 : vector<8x16xf32>
    %8 = math.exp %7 : vector<8x16xf32>
    %cst_7 = arith.constant 1.000000e+00 : f32
    %9 = vector.broadcast %cst_7 : f32 to vector<8x16xf32>
    %10 = arith.addf %9, %8 : vector<8x16xf32>
    %11 = arith.divf %9, %10 : vector<8x16xf32>
    %c0_8 = arith.constant 0 : index
    %c0_9 = arith.constant 0 : index
    %12 = vector.load %arg6[%c0_8, %c0_9] : memref<8x16xf32, #tpu.memory_space<vmem>>, vector<8x16xf32>
    tpu.vector_store %arg6[%c0_8, %c0_9], %11 {strides = array<i32>} : memref<8x16xf32, #tpu.memory_space<vmem>>, vector<8x16xf32>,
    return
  }
  func.func @transform_0(%arg0: i32, %arg1: i32) -> (i32, i32) {
    %c0_i32 = arith.constant 0 : i32
    %c0_i32_0 = arith.constant 0 : i32
    return %arg0, %c0_i32 : i32, i32
  }
  func.func @transform_1(%arg0: i32, %arg1: i32) -> (i32, i32) {
    %c0_i32 = arith.constant 0 : i32
    %c0_i32_0 = arith.constant 0 : i32
    return %c0_i32, %arg1 : i32, i32
  }
  func.func @transform_2(%arg0: i32, %arg1: i32) -> (i32, i32) {
    %c0_i32 = arith.constant 0 : i32
    %c0_i32_0 = arith.constant 0 : i32
    return %c0_i32, %arg1 : i32, i32
  }
  func.func @transform_3(%arg0: i32, %arg1: i32) -> (i32, i32) {
    %c0_i32 = arith.constant 0 : i32
    return %arg0, %arg1 : i32, i32
  }
  func.func @transform_4(%arg0: i32, %arg1: i32) -> (i32, i32) {
    %c0_i32 = arith.constant 0 : i32
    return %arg0, %arg1 : i32, i32
  }
}

</mosaic_0001>

<bundles_post_ra>
// kernel: linear_probe_forward.1
= control target key start
LH: loop header
LB: loop body
LE: loop exit
PB: predicated region body
PF: predicated region fallthrough
CT: control target
= control target key end

     0   :  { %10 = vsyncpa [#allocation3], 0  ;;  %v223_v3 = vmov 0.0|0.0   ;;  %vm224_vm0 = vmmov 0   ;;  %v225_v6 = vmov 0.0   ;;  %s297_s0 = inlined_call_operand.vmem [shape: f32[8,32], index: 0, kind: input, shape index: {}]   ;;  %s298_s1 = inlined_call_operand.vmem [shape: f32[32,16], index: 1, kind: input, shape index: {}]   ;;  %s299_s2 = inlined_call_operand.vmem [shape: f32[1,16], index: 2, kind: input, shape index: {}]   ;;  %s300_s3 = inlined_call_operand.hbm [shape: f32[8,16], index: 3, kind: output, shape index: {0}]   ;;  %s301_s4 = inlined_call_operand.hbm [shape: f32[8,16], index: 4, kind: output, shape index: {1}]  }
   0x1   :  { %v19_v0 = vld [vmem:[%s298_s1] sm:$0xff]  ;;  %v20_v1 = vld [vmem:[%s298_s1 + $0x8] sm:$0xff]  ;;  %v21_v2 = vld [vmem:[%s298_s1 + $0x10] sm:$0xff]  ;;  %160 = vmatprep.subr.bf16.mxu0 %v223_v3  ;;  %157 = vmatprep.mubr.msk.f32.mxu0 %vm224_vm0, %v225_v6 }
   0x2   :  { %v161_v4 = vpack.c.bf16 %v20_v1, %v19_v0  ;;  %v22_v5 = vld [vmem:[%s298_s1 + $0x18] sm:$0xff] }
   0x3   :  { %11 = vsyncpa [#allocation5], 0  ;;  %v164_v7 = vpack.c.bf16 %v22_v5, %v21_v2  ;;  %v18_v8 = vld [vmem:[%s297_s0] sm:$0xff]  ;;  %vm30_vm1 = vcmask 261120   ;;  %s226_s27 = smov [#allocation2]   ;;  %vm104_vm2 = vcmask 130048  }
   0x4   :  { %162 = vmatpush3.bf16.msra.mxu0 %v161_v4  ;;  %v141_v9 = vld [vmem:[%s299_s2] ss:$0 sm:$0xff]  ;;  %s119_s1 = sshll.u32 %s226_s27, 4  ;;  %s120_s1 = int_to_ptr.vmem [resolvable:$true] %s119_s1 }
   0x5   :  { %163 = vmatprep.subr.bf16.mxu0 %v223_v3  ;;  %s175_s28 = scalar_lea.vmem %s120_s1, 128  ;;  %p180_p1 = scmp.lt.s32.totalorder %s120_s1, %s120_s1 }
   0x6   :  { %p176_p0 = scmp.ne.s32.totalorder %s120_s1, %s175_s28  ;;  %p181_p2 = scmp.lt.s32.totalorder %s175_s28, %s175_s28 }
   0x8   :  { %165 = vmatpush3.bf16.msra.mxu0 %v164_v7  ;;  %p182_p3 = por %p181_p2, %p180_p1 }
   0xa   :  { %p183_p4 = pnand %p182_p3, %p176_p0 }
   0xb   :  { %158 = vmatmul.mubr.msk.f32.vlgmr.msra.gmra.mrb[0].mxu0 %vm30_vm1, %v18_v8 }
  0xde   :  { %v100_v10 = vpop.f32.mrb[0].mxu0 }
  0xdf   :  { %v101_v11 = vadd.f32 %v141_v9, %v100_v10  ;;  %v159_v12 = vpop.f32.mrb[1].mxu0 }
  0xe1   :  { %v143_v13 = vmul.f32 -1.442695, %v101_v11  ;;  %105 = vst.msk [vmem:[#allocation2] sm:$0xff] %vm104_vm2, %v101_v11 }
  0xe2   :  { %186 = shalt.err (!%p183_p4)
}
  0xe3   :  { %s187_s2 = scalar_lea.hbm %s300_s3, 128 }
  0xe4   :  { %p188_p5 = scmp.ne.s32.totalorder %s300_s3, %s187_s2  ;;  %p191_p6 = scmp.lt.u32.totalorder %s187_s2, %s300_s3 }
  0xe6   :  { %p193_p7 = pnand %p191_p6, %p188_p5 }
  0xe8   :  { %196 = shalt.err (!%p193_p7)
}
  0xe9   :  { %122 = dma.vmem_to_hbm [thread:$0]  %s120_s1, 128, %s300_s3, [#allocation3]   ;;  %171 = vpow2.f32 %v143_v13 }
  0xea   :  { %s227_s10 = smov [#allocation4]  }
  0xeb   :  { %s129_s11 = sshll.u32 %s227_s10, 4  ;;  %s130_s11 = int_to_ptr.vmem [resolvable:$true] %s129_s11 }
  0xec   :  { %s197_s12 = scalar_lea.vmem %s130_s11, 128  ;;  %p202_p9 = scmp.lt.s32.totalorder %s130_s11, %s130_s11 }
  0xed   :  { %p198_p8 = scmp.ne.s32.totalorder %s130_s11, %s197_s12  ;;  %p203_p10 = scmp.lt.s32.totalorder %s197_s12, %s197_s12 }
  0xef   :  { %p204_p11 = por %p203_p10, %p202_p9 }
  0xf1   :  { %p205_p12 = pnand %p204_p11, %p198_p8 }
  0xf3   :  { %v172_v14 = vpop.eup %171 }
  0xf4   :  { %v109_v15 = vadd.f32 1.0, %v172_v14 }
  0xf6   :  { %173 = vrcp.f32 %v109_v15 }
 0x100   :  { %v174_v16 = vpop.eup %173 }
 0x101   :  { %112 = vst.msk [vmem:[#allocation4] sm:$0xff] %vm104_vm2, %v174_v16 }
 0x102   :  { %208 = shalt.err (!%p205_p12)
}
 0x103   :  { %s209_s3 = scalar_lea.hbm %s301_s4, 128 }
 0x104   :  { %p210_p13 = scmp.ne.s32.totalorder %s301_s4, %s209_s3  ;;  %p213_p0 = scmp.lt.u32.totalorder %s209_s3, %s301_s4 }
 0x106   :  { %p215_p1 = pnand %p213_p0, %p210_p13 }
 0x108   :  { %218 = shalt.err (!%p215_p1)
}
 0x109   :  { %132 = dma.vmem_to_hbm [thread:$0]  %s130_s11, 128, %s301_s4, [#allocation5]  }
 0x10a   :  { %219 = dma.done.wait [#allocation3], 128  }
 0x10b   :  { %220 = vsyncadd [#allocation3], 4294967168 }
 0x10c   :  { %221 = dma.done.wait [#allocation5], 128  }
 0x10d   :  { %222 = vsyncadd [#allocation5], 4294967168 }
 0x10e   :  { %139 = vsyncpa [#allocation3], 1 }
 0x10f   :  { %140 = vsyncpa [#allocation5], 1 }

</bundles_post_ra>
